<compile_context>
chip_gen: v7x
topology: tpu7x:2x2x1
jax: 0.10.0
libtpu: 0.0.40
codegen_flags: <defaults>
</compile_context>

<pallas_src>
import functools

import jax
import jax.numpy as jnp
from jax import lax
from jax.experimental import pallas as pl
from jax.experimental.pallas import tpu as pltpu


# Tap order matches w2[ky, kx] row-major (ky = oy + 1, kx = ox + 1).
_TAP_OFFSETS = tuple((oy, ox) for oy in (-1, 0, 1) for ox in (-1, 0, 1))


def _bottleneck_kernel(x_ref, w1t_ref, w2f_ref, w3t_ref, mask_ref, o_ref, *, W):
    # Per grid step (one batch element); channels on sublanes, H*W on lanes.
    #   x_ref:    (1, Cin, HW)
    #   w1t_ref:  (wp, Cin)      conv1 (1x1) weights, transposed, zero-padded to wp rows
    #   w2f_ref:  (width, 9*wp)  conv2 (3x3) weights fused over the 9 taps
    #   w3t_ref:  (Cout, width)  conv3 (1x1) weights, transposed
    #   mask_ref: (9, HW)        per-tap validity mask (1.0 interior, 0.0 halo)
    #   o_ref:    (1, Cout, HW)
    x = x_ref[0].astype(jnp.float32)                    # (Cin, HW)
    HW = x.shape[1]

    # ---- conv1: 1x1 as (wp, Cin) @ (Cin, HW), then ReLU ----------------------
    h1 = jnp.maximum(
        jnp.dot(w1t_ref[...], x, preferred_element_type=jnp.float32), 0.0)  # (wp, HW)

    # ---- conv2: 3x3, pad=1. 9 lane-rolled taps + edge masks, stacked along ---
    # ---- sublanes (8-aligned) and contracted in a single K=9*wp matmul. ------
    taps = []
    for k, (oy, ox) in enumerate(_TAP_OFFSETS):
        off = oy * W + ox
        if off == 0:
            taps.append(h1)
        else:
            t = pltpu.roll(h1, (-off) % HW, axis=1)     # XLU lane rotation
            taps.append(t * mask_ref[k:k + 1, :])       # zero the wrap/halo lanes
    patches = jnp.concatenate(taps, axis=0)             # (9*wp, HW)
    h2 = jnp.maximum(
        jnp.dot(w2f_ref[...], patches, preferred_element_type=jnp.float32),
        0.0)                                            # (width, HW)

    # ---- conv3: 1x1 as (Cout, width) @ (width, HW) ---------------------------
    h3 = jnp.dot(w3t_ref[...], h2, preferred_element_type=jnp.float32)  # (Cout, HW)

    # ---- identity residual + final ReLU (lane-dense store, HW = 2*128) ------
    # TODO(synk): downsample / stride!=1 Bottleneck variants not implemented
    # (this module instance has downsample=None, stride=1 -> identity add).
    o_ref[0] = jnp.maximum(h3 + x, 0.0).astype(o_ref.dtype)


def bottleneck_forward(x_nchw, w1, w2, w3):
    """x_nchw: (N, Cin, H, W);  w1: (Cin, width);  w2: (3,3,width,width) HWIO;
    w3: (width, Cout)."""
    N, Cin, H, W = x_nchw.shape
    width = w1.shape[1]
    Cout = w3.shape[1]
    assert Cin == Cout, "identity residual requires inplanes == planes*expansion"
    HW = H * W

    # Free view: NCHW -> (N, C, H*W); spatial axis lands on lanes.
    x_flat = x_nchw.reshape(N, Cin, HW)

    # Pad the conv2-input channel axis to a multiple of 8 sublanes so the
    # in-register tap stack is tile-aligned (extra K is free on the MXU).
    wp = -(-width // 8) * 8
    w1t = jnp.zeros((wp, Cin), w1.dtype).at[:width, :].set(w1.T)            # (wp, Cin)
    w2r = w2.reshape(9, width, width)                                        # [tap, cin, cout]
    w2p = jnp.zeros((9, wp, width), w2.dtype).at[:, :width, :].set(w2r)
    w2f = jnp.transpose(w2p.reshape(9 * wp, width))                          # (width, 9*wp)
    w3t = jnp.transpose(w3)                                                  # (Cout, width)

    # Host-built per-tap validity masks (the zero-padding halo of the 3x3 conv).
    ys = jnp.repeat(jnp.arange(H), W)
    xs = jnp.tile(jnp.arange(W), H)
    masks = [((ys + oy >= 0) & (ys + oy < H) & (xs + ox >= 0) & (xs + ox < W))
             for (oy, ox) in _TAP_OFFSETS]
    tap_mask = jnp.stack(masks).astype(x_nchw.dtype)                         # (9, HW)

    flops = 2 * N * HW * (Cin * width + 9 * width * width + width * Cout)
    bytes_accessed = 4 * (x_flat.size + N * Cout * HW
                          + w1t.size + w2f.size + w3t.size + tap_mask.size)

    out_flat = pl.pallas_call(
        functools.partial(_bottleneck_kernel, W=W),
        out_shape=jax.ShapeDtypeStruct((N, Cout, HW), x_nchw.dtype),
        grid_spec=pltpu.PrefetchScalarGridSpec(
            num_scalar_prefetch=0,
            grid=(N,),   # parallel batch axis -> shards across the 2 TCs on v7x
            in_specs=[
                pl.BlockSpec((1, Cin, HW), lambda n: (n, 0, 0)),
                pl.BlockSpec((wp, Cin), lambda n: (0, 0)),
                pl.BlockSpec((width, 9 * wp), lambda n: (0, 0)),
                pl.BlockSpec((Cout, width), lambda n: (0, 0)),
                pl.BlockSpec((9, HW), lambda n: (0, 0)),
            ],
            out_specs=pl.BlockSpec((1, Cout, HW), lambda n: (n, 0, 0)),
        ),
        compiler_params=pltpu.CompilerParams(dimension_semantics=("parallel",)),
        cost_estimate=pl.CostEstimate(flops=flops, transcendentals=0,
                                      bytes_accessed=bytes_accessed),
    )(x_flat, w1t, w2f, w3t, tap_mask)

    # Free view back to NCHW.
    return out_flat.reshape(N, Cout, H, W)


def reference_forward(x_nchw, w1, w2, w3):
    """Pure-JAX reference using lax convolutions (NHWC / HWIO)."""
    x = jnp.transpose(x_nchw, (0, 2, 3, 1))
    dn = lax.conv_dimension_numbers(x.shape, (1, 1, w1.shape[0], w1.shape[1]),
                                    ("NHWC", "HWIO", "NHWC"))
    h = lax.conv_general_dilated(x, w1[None, None], (1, 1), "VALID",
                                 dimension_numbers=dn)
    h = jnp.maximum(h, 0.0)
    dn2 = lax.conv_dimension_numbers(h.shape, w2.shape, ("NHWC", "HWIO", "NHWC"))
    h = lax.conv_general_dilated(h, w2, (1, 1), ((1, 1), (1, 1)),
                                 dimension_numbers=dn2)
    h = jnp.maximum(h, 0.0)
    dn3 = lax.conv_dimension_numbers(h.shape, (1, 1, w3.shape[0], w3.shape[1]),
                                     ("NHWC", "HWIO", "NHWC"))
    h = lax.conv_general_dilated(h, w3[None, None], (1, 1), "VALID",
                                 dimension_numbers=dn3)
    out = jnp.maximum(h + x, 0.0)
    return jnp.transpose(out, (0, 3, 1, 2))


if __name__ == "__main__":
    # Bottleneck(inplanes=16, planes=4, stride=1, downsample=None,
    #            groups=1, base_width=64, dilation=1)
    #   width = 4, out channels = planes * expansion = 16
    N, Cin, H, W = 2, 16, 16, 16
    planes = 4
    width = int(planes * (64 / 64.0)) * 1
    Cout = planes * 4

    key = jax.random.PRNGKey(0)
    kx, k1, k2, k3 = jax.random.split(key, 4)
    x = jax.random.normal(kx, (N, Cin, H, W), dtype=jnp.float32)
    # deterministic synthetic weights (no bias, as in the PyTorch module)
    w1 = jax.random.normal(k1, (Cin, width), dtype=jnp.float32) * 0.1          # conv1x1
    w2 = jax.random.normal(k2, (3, 3, width, width), dtype=jnp.float32) * 0.1  # conv3x3 HWIO
    w3 = jax.random.normal(k3, (width, Cout), dtype=jnp.float32) * 0.1         # conv1x1

    out = jax.block_until_ready(bottleneck_forward(x, w1, w2, w3))
    ref = jax.block_until_ready(reference_forward(x, w1, w2, w3))
    assert out.shape == (N, Cout, H, W)
    assert jnp.allclose(out, ref, rtol=1e-4, atol=1e-4), "mismatch vs reference"
    print("KERNEL_OK")
</pallas_src>

<mosaic_0001>
module attributes {stable_mosaic.version = 11 : i64} {
  func.func @_bottleneck_kernel(%arg0: i32, %arg1: memref<1x16x256xf32, #tpu.memory_space<vmem>>, %arg2: memref<8x16xf32, #tpu.memory_space<vmem>>, %arg3: memref<4x72xf32, #tpu.memory_space<vmem>>, %arg4: memref<16x4xf32, #tpu.memory_space<vmem>>, %arg5: memref<9x256xf32, #tpu.memory_space<vmem>>, %arg6: memref<1x16x256xf32, #tpu.memory_space<vmem>>) attributes {dimension_semantics = [#tpu.dimension_semantics<parallel>], iteration_bounds = array<i64: 2>, scalar_prefetch = 0 : i64, scratch_operands = 0 : i64, tpu.core_type = #tpu.core_type<tc>, window_params = [{transform_indices = @transform_0, window_bounds = array<i64: 1, 16, 256>}, {pipeline_mode = #tpu.pipeline_mode<synchronous>, transform_indices = @transform_1, window_bounds = array<i64: 8, 16>}, {pipeline_mode = #tpu.pipeline_mode<synchronous>, transform_indices = @transform_2, window_bounds = array<i64: 4, 72>}, {pipeline_mode = #tpu.pipeline_mode<synchronous>, transform_indices = @transform_3, window_bounds = array<i64: 16, 4>}, {pipeline_mode = #tpu.pipeline_mode<synchronous>, transform_indices = @transform_4, window_bounds = array<i64: 9, 256>}, {transform_indices = @transform_5, window_bounds = array<i64: 1, 16, 256>}]} {
    %c0 = arith.constant 0 : index
    %c0_0 = arith.constant 0 : index
    %c0_1 = arith.constant 0 : index
    %0 = vector.load %arg1[%c0, %c0_0, %c0_1] : memref<1x16x256xf32, #tpu.memory_space<vmem>>, vector<1x16x256xf32>
    %1 = vector.shape_cast %0 : vector<1x16x256xf32> to vector<16x256xf32>
    %c0_2 = arith.constant 0 : index
    %c0_3 = arith.constant 0 : index
    %2 = vector.load %arg2[%c0_2, %c0_3] : memref<8x16xf32, #tpu.memory_space<vmem>>, vector<8x16xf32>
    %cst = arith.constant dense<0.000000e+00> : vector<8x256xf32>
    %3 = tpu.matmul %2, %1, %cst {dimension_numbers = #tpu.dot_dimension_numbers<[1], [0], [0], [1], [0, 0, 1, 1], [], []>} : vector<8x16xf32>, vector<16x256xf32>, vector<8x256xf32> -> vector<8x256xf32>
    %cst_4 = arith.constant 0.000000e+00 : f32
    %4 = vector.broadcast %cst_4 : f32 to vector<8x256xf32>
    %5 = arith.maximumf %3, %4 : vector<8x256xf32>
    %c17_i32 = arith.constant 17 : i32
    %6 = tpu.dynamic_rotate %5 by %c17_i32 dim 1 : vector<8x256xf32>, i32 -> vector<8x256xf32>
    %c0_5 = arith.constant 0 : index
    %c0_6 = arith.constant 0 : index
    %7 = vector.load %arg5[%c0_5, %c0_6] : memref<9x256xf32, #tpu.memory_space<vmem>>, vector<1x256xf32>
    %8 = vector.broadcast %7 : vector<1x256xf32> to vector<8x256xf32>
    %9 = arith.mulf %6, %8 : vector<8x256xf32>
    %c16_i32 = arith.constant 16 : i32
    %10 = tpu.dynamic_rotate %5 by %c16_i32 dim 1 : vector<8x256xf32>, i32 -> vector<8x256xf32>
    %c1 = arith.constant 1 : index
    %c0_7 = arith.constant 0 : index
    %11 = vector.load %arg5[%c1, %c0_7] : memref<9x256xf32, #tpu.memory_space<vmem>>, vector<1x256xf32>
    %12 = vector.broadcast %11 : vector<1x256xf32> to vector<8x256xf32>
    %13 = arith.mulf %10, %12 : vector<8x256xf32>
    %c15_i32 = arith.constant 15 : i32
    %14 = tpu.dynamic_rotate %5 by %c15_i32 dim 1 : vector<8x256xf32>, i32 -> vector<8x256xf32>
    %c2 = arith.constant 2 : index
    %c0_8 = arith.constant 0 : index
    %15 = vector.load %arg5[%c2, %c0_8] : memref<9x256xf32, #tpu.memory_space<vmem>>, vector<1x256xf32>
    %16 = vector.broadcast %15 : vector<1x256xf32> to vector<8x256xf32>
    %17 = arith.mulf %14, %16 : vector<8x256xf32>
    %c1_i32 = arith.constant 1 : i32
    %18 = tpu.dynamic_rotate %5 by %c1_i32 dim 1 : vector<8x256xf32>, i32 -> vector<8x256xf32>
    %c3 = arith.constant 3 : index
    %c0_9 = arith.constant 0 : index
    %19 = vector.load %arg5[%c3, %c0_9] : memref<9x256xf32, #tpu.memory_space<vmem>>, vector<1x256xf32>
    %20 = vector.broadcast %19 : vector<1x256xf32> to vector<8x256xf32>
    %21 = arith.mulf %18, %20 : vector<8x256xf32>
    %c255_i32 = arith.constant 255 : i32
    %22 = tpu.dynamic_rotate %5 by %c255_i32 dim 1 : vector<8x256xf32>, i32 -> vector<8x256xf32>
    %c5 = arith.constant 5 : index
    %c0_10 = arith.constant 0 : index
    %23 = vector.load %arg5[%c5, %c0_10] : memref<9x256xf32, #tpu.memory_space<vmem>>, vector<1x256xf32>
    %24 = vector.broadcast %23 : vector<1x256xf32> to vector<8x256xf32>
    %25 = arith.mulf %22, %24 : vector<8x256xf32>
    %c241_i32 = arith.constant 241 : i32
    %26 = tpu.dynamic_rotate %5 by %c241_i32 dim 1 : vector<8x256xf32>, i32 -> vector<8x256xf32>
    %c6 = arith.constant 6 : index
    %c0_11 = arith.constant 0 : index
    %27 = vector.load %arg5[%c6, %c0_11] : memref<9x256xf32, #tpu.memory_space<vmem>>, vector<1x256xf32>
    %28 = vector.broadcast %27 : vector<1x256xf32> to vector<8x256xf32>
    %29 = arith.mulf %26, %28 : vector<8x256xf32>
    %c240_i32 = arith.constant 240 : i32
    %30 = tpu.dynamic_rotate %5 by %c240_i32 dim 1 : vector<8x256xf32>, i32 -> vector<8x256xf32>
    %c7 = arith.constant 7 : index
    %c0_12 = arith.constant 0 : index
    %31 = vector.load %arg5[%c7, %c0_12] : memref<9x256xf32, #tpu.memory_space<vmem>>, vector<1x256xf32>
    %32 = vector.broadcast %31 : vector<1x256xf32> to vector<8x256xf32>
    %33 = arith.mulf %30, %32 : vector<8x256xf32>
    %c239_i32 = arith.constant 239 : i32
    %34 = tpu.dynamic_rotate %5 by %c239_i32 dim 1 : vector<8x256xf32>, i32 -> vector<8x256xf32>
    %c8 = arith.constant 8 : index
    %c0_13 = arith.constant 0 : index
    %35 = vector.load %arg5[%c8, %c0_13] : memref<9x256xf32, #tpu.memory_space<vmem>>, vector<1x256xf32>
    %36 = vector.broadcast %35 : vector<1x256xf32> to vector<8x256xf32>
    %37 = arith.mulf %34, %36 : vector<8x256xf32>
    %38 = tpu.concatenate %9, %13, %17, %21, %5, %25, %29, %33, %37 in 0 : vector<8x256xf32>, vector<8x256xf32>, vector<8x256xf32>, vector<8x256xf32>, vector<8x256xf32>, vector<8x256xf32>, vector<8x256xf32>, vector<8x256xf32>, vector<8x256xf32> -> vector<72x256xf32>
    %c0_14 = arith.constant 0 : index
    %c0_15 = arith.constant 0 : index
    %39 = vector.load %arg3[%c0_14, %c0_15] : memref<4x72xf32, #tpu.memory_space<vmem>>, vector<4x72xf32>
    %cst_16 = arith.constant dense<0.000000e+00> : vector<4x256xf32>
    %40 = tpu.matmul %39, %38, %cst_16 {dimension_numbers = #tpu.dot_dimension_numbers<[1], [0], [0], [1], [0, 0, 1, 1], [], []>} : vector<4x72xf32>, vector<72x256xf32>, vector<4x256xf32> -> vector<4x256xf32>
    %cst_17 = arith.constant 0.000000e+00 : f32
    %41 = vector.broadcast %cst_17 : f32 to vector<4x256xf32>
    %42 = arith.maximumf %40, %41 : vector<4x256xf32>
    %c0_18 = arith.constant 0 : index
    %c0_19 = arith.constant 0 : index
    %43 = vector.load %arg4[%c0_18, %c0_19] : memref<16x4xf32, #tpu.memory_space<vmem>>, vector<16x4xf32>
    %cst_20 = arith.constant dense<0.000000e+00> : vector<16x256xf32>
    %44 = tpu.matmul %43, %42, %cst_20 {dimension_numbers = #tpu.dot_dimension_numbers<[1], [0], [0], [1], [0, 0, 1, 1], [], []>} : vector<16x4xf32>, vector<4x256xf32>, vector<16x256xf32> -> vector<16x256xf32>
    %45 = arith.addf %44, %1 : vector<16x256xf32>
    %cst_21 = arith.constant 0.000000e+00 : f32
    %46 = vector.broadcast %cst_21 : f32 to vector<16x256xf32>
    %47 = arith.maximumf %45, %46 : vector<16x256xf32>
    %c0_22 = arith.constant 0 : index
    %c0_23 = arith.constant 0 : index
    %c0_24 = arith.constant 0 : index
    %48 = vector.load %arg6[%c0_22, %c0_23, %c0_24] : memref<1x16x256xf32, #tpu.memory_space<vmem>>, vector<1x16x256xf32>
    %49 = vector.shape_cast %48 : vector<1x16x256xf32> to vector<16x256xf32>
    %50 = vector.shape_cast %47 : vector<16x256xf32> to vector<1x16x256xf32>
    tpu.vector_store %arg6[%c0_22, %c0_23, %c0_24], %50 {strides = array<i32>} : memref<1x16x256xf32, #tpu.memory_space<vmem>>, vector<1x16x256xf32>,
    return
  }
  func.func @transform_0(%arg0: i32) -> (i32, i32, i32) {
    %c0_i32 = arith.constant 0 : i32
    %c0_i32_0 = arith.constant 0 : i32
    %c0_i32_1 = arith.constant 0 : i32
    return %arg0, %c0_i32, %c0_i32_0 : i32, i32, i32
  }
  func.func @transform_1(%arg0: i32) -> (i32, i32) {
    %c0_i32 = arith.constant 0 : i32
    %c0_i32_0 = arith.constant 0 : i32
    %c0_i32_1 = arith.constant 0 : i32
    return %c0_i32, %c0_i32_0 : i32, i32
  }
  func.func @transform_2(%arg0: i32) -> (i32, i32) {
    %c0_i32 = arith.constant 0 : i32
    %c0_i32_0 = arith.constant 0 : i32
    %c0_i32_1 = arith.constant 0 : i32
    return %c0_i32, %c0_i32_0 : i32, i32
  }
  func.func @transform_3(%arg0: i32) -> (i32, i32) {
    %c0_i32 = arith.constant 0 : i32
    %c0_i32_0 = arith.constant 0 : i32
    %c0_i32_1 = arith.constant 0 : i32
    return %c0_i32, %c0_i32_0 : i32, i32
  }
  func.func @transform_4(%arg0: i32) -> (i32, i32) {
    %c0_i32 = arith.constant 0 : i32
    %c0_i32_0 = arith.constant 0 : i32
    %c0_i32_1 = arith.constant 0 : i32
    return %c0_i32, %c0_i32_0 : i32, i32
  }
  func.func @transform_5(%arg0: i32) -> (i32, i32, i32) {
    %c0_i32 = arith.constant 0 : i32
    %c0_i32_0 = arith.constant 0 : i32
    %c0_i32_1 = arith.constant 0 : i32
    return %arg0, %c0_i32, %c0_i32_0 : i32, i32, i32
  }
}

</mosaic_0001>

<bundles_post_ra>
// kernel: tpu_custom_call.1
= control target key start
LH: loop header
LB: loop body
LE: loop exit
PB: predicated region body
PF: predicated region fallthrough
CT: control target
= control target key end

     0   :  { %10 = vsyncpa [#allocation3], 0  ;;  %s1504_s0 = inlined_call_operand.hbm [shape: f32[2,16,256], index: 0, kind: input, shape index: {}]   ;;  %s1505_s1 = inlined_call_operand.hbm [shape: f32[8,16], index: 1, kind: input, shape index: {}]   ;;  %s1506_s2 = inlined_call_operand.hbm [shape: f32[4,72], index: 2, kind: input, shape index: {}]   ;;  %s1507_s3 = inlined_call_operand.vmem [shape: f32[16,4], index: 3, kind: input, shape index: {}]   ;;  %s1508_s4 = inlined_call_operand.vmem [shape: f32[9,256], index: 4, kind: input, shape index: {}]   ;;  %s1509_s5 = inlined_call_operand.hbm [shape: f32[2,16,256], index: 5, kind: output, shape index: {}]  }
   0x1   :  { %12 = vsyncpa [#allocation3 + $0x1], 0 }
   0x2   :  { %13 = vsyncpa [#allocation6], 0 }
   0x3   :  { %14 = vsyncpa [#allocation4], 0 }
   0x4   :  { %16 = vsyncpa [#allocation4 + $0x1], 0  ;;  %s1148_s18 = smov 0   ;;  %s1150_s19 = smov 0  }
   0x5   :  { %s1152_s20 = smov 0   ;;  %s1154_s21 = smov 0  }
   0x6 LB: > { %s1169_s22 = sadd.s32 4294967295, %s1100_s21   ;;  %s812_s23 = sadd.s32 4294967294, %s1100_s21   ;;  %s1100_s21 = sphi %s1154_s21, %s1534_s21   ;;  %s1096_s20 = sphi %s1152_s20, %s1533_s20   ;;  %s1092_s19 = sphi %s1150_s19, %s1532_s19   ;;  %s1088_s18 = sphi %s1148_s18, %s1531_s18  }
   0x7   : > { %s1173_s24 = sadd.s32 1, %s1100_s21   ;;  %s29_s25 = sadd.s32 1, %s1096_s20 }
   0x8   : > { %s26_s26 = ssub.s32 %s1100_s21, %s1173_s24  ;;  %p36_p0 = scmp.ne.s32.totalorder %s1096_s20, %s1092_s19 }
   0x9   : > { %p27_p1 = scmp.eq.s32.totalorder %s26_s26, 0  ;;  %p37_p2 = scmp.eq.s32.totalorder %s1100_s21, 0 }
   0xa   : > { %p42_p3 = scmp.ne.s32.totalorder %s1092_s19, %s1088_s18  ;;  %p1510_p4 = scmp.eq.s32.totalorder %s1169_s22, 0 }
   0xb   : > { %s1185_s27 = scalar_select %p27_p1, %s1096_s20, %s29_s25  }
   0xc   : > { %p1187_p5 = por %p37_p2, %p36_p0  ;;  %p1193_p6 = por %p1510_p4, %p42_p3 }
   0xd   : > { %p150_p7 = scmp.eq.s32.totalorder %s1169_s22, 1  ;;  %p156_p8 = scmp.eq.s32.totalorder %s812_s23, 1 }
   0xe   : > { %s1516_s29 = scalar_select %p1193_p6, 1, 0 }
   0xf   : > { %p813_p9 = scmp.ge.s32.totalorder %s1100_s21, 1  ;;  %p163_p10 = scmp.lt.s32.totalorder %s1100_s21, 3 }
  0x10   : > { %p1200_p11 = por %p150_p7, %p36_p0  ;;  %p1204_p12 = por %p156_p8, %p42_p3 }
  0x11   : > { %p1208_p13 = pnand %p813_p9, %p163_p10  ;;  %s1102_s8 = smov [#allocation5]  }
  0x12   : > { %s1517_s30 = scalar_select %p1200_p11, 1, 0 }
  0x13   : > { %s1518_s6 = scalar_select %p1204_p12, 1, 0 }
  0x14   : > { %s1519_s7 = scalar_select %p1208_p13, 1, 0 }
  0x15   : > { %p877_p2 = pneg %p1208_p13  ;;  %s176_s9 = sshll.u32 %s1102_s8, 4  ;;  %s177_s9 = int_to_ptr.vmem [resolvable:$true] %s176_s9 }
  0x16   : > { %p894_p4 = scmp.lt.s32.totalorder %s1100_s21, 2  ;;  %p1520_p0 = scmp.eq.s32.totalorder %s1169_s22, 0 }
  0x17   : > { %s1103_s12 = smov [#allocation7]   ;;  %s944_s16 = scalar_lea.hbm %s1505_s1, 128 }
  0x18   : > { %p1218_p7 = pnand %p877_p2, %p1520_p0  ;;  %p1224_p3 = pnand %p894_p4, %p1187_p5 }
  0x19   : > { %s187_s13 = sshll.u32 %s1103_s12, 4  ;;  %p945_p8 = scmp.ne.s32.totalorder %s1505_s1, %s944_s16  ;;  %s1228_s13 = int_to_ptr.vmem [resolvable:$true] %s187_s13 }
  0x1a   : > { %s1522_s11 = scalar_select %p1224_p3, 1, 0 }
  0x1b   : > { %p946_p9 = pneg %p1218_p7  ;;  %p951_p10 = scmp.lt.u32.totalorder %s944_s16, %s1505_s1 }
  0x1d   : > { %p947_p4 = pnand %p946_p9, %p945_p8 }
  0x1f   : > { %p948_p5 = pneg %p947_p4 }
  0x21   : > { %p953_p2 = pnand %p951_p10, %p948_p5 }
  0x23   : > { %956 = shalt.err (!%p953_p2)
}
  0x24   : > { %s957_s28 = scalar_lea.vmem %s177_s9, 128  ;;  %p965_p11 = scmp.lt.s32.totalorder %s177_s9, %s177_s9 }
  0x25   : > { %p958_p0 = scmp.ne.s32.totalorder %s177_s9, %s957_s28  ;;  %p966_p6 = scmp.lt.s32.totalorder %s957_s28, %s957_s28 }
  0x27   : > { %p960_p1 = pnand %p958_p0, %p946_p9  ;;  %p967_p13 = por %p966_p6, %p965_p11 }
  0x29   : > { %p961_p12 = pneg %p960_p1 }
  0x2b   : > { %p968_p3 = pnand %p967_p13, %p961_p12 }
  0x2d   : > { %971 = shalt.err (!%p968_p3)
}
  0x2e   : > { %880 = dma.hbm_to_vmem [thread:$0]  (!%p1218_p7), %s1505_s1, 128, %s177_s9, [#allocation6]  }
  0x2f   : > { %s204_s14 = sand.u32 1, %s1096_s20   ;;  %s972_s17 = scalar_lea.hbm %s1506_s2, 64 }
  0x30   : > { %p973_p1 = scmp.ne.s32.totalorder %s1506_s2, %s972_s17  ;;  %p979_p12 = scmp.lt.u32.totalorder %s972_s17, %s1506_s2 }
  0x32   : > { %p975_p6 = pnand %p973_p1, %p946_p9 }
  0x34   : > { %p976_p11 = pneg %p975_p6 }
  0x36   : > { %p981_p13 = pnand %p979_p12, %p976_p11 }
  0x38   : > { %984 = shalt.err (!%p981_p13)
}
  0x39   : > { %s985_s9 = scalar_lea.vmem %s1228_s13, 64  ;;  %p993_p5 = scmp.lt.s32.totalorder %s1228_s13, %s1228_s13 }
  0x3a   : > { %p986_p3 = scmp.ne.s32.totalorder %s1228_s13, %s985_s9  ;;  %p994_p10 = scmp.lt.s32.totalorder %s985_s9, %s985_s9 }
  0x3c   : > { %p988_p8 = pnand %p986_p3, %p946_p9  ;;  %p995_p2 = por %p994_p10, %p993_p5 }
  0x3e   : > { %p989_p4 = pneg %p988_p8 }
  0x40   : > { %p996_p0 = pnand %p995_p2, %p989_p4 }
  0x42   : > { %999 = shalt.err (!%p996_p0)
}
  0x43   : > { %883 = dma.hbm_to_vmem [thread:$0]  (!%p1218_p7), %s1506_s2, 64, %s1228_s13, [#allocation6]  }
  0x44   : > { %s817_s15 = sshll.u32 %s204_s14, 5  ;;  %s843_s16 = sshll.u32 %s1100_s21, 9 }
  0x45   : > { %s1282_s25 = scalar_lea.hbm %s1504_s0, %s843_s16  ;;  %s208_s10 = scalar_lea.vmem [#allocation2], %s817_s15 }
  0x46   : > { %s215_s26 = sshll.u32 %s208_s10, 4  ;;  %s1286_s28 = scalar_lea.sflag [#allocation3], %s204_s14  ;;  %s1284_s26 = int_to_ptr.vmem [resolvable:$true] %s215_s26 }
  0x47   : > { %s1000_s9 = scalar_lea.hbm %s1282_s25, 512  ;;  %p1523_p7 = scmp.ne.s32.totalorder %s1522_s11, 0 }
  0x48   : > { %p1001_p9 = scmp.ne.s32.totalorder %s1282_s25, %s1000_s9  ;;  %s1005_s12 = scalar_lea.hbm %s1504_s0, 1024 }
  0x49   : > { %p1002_p1 = pneg %p1523_p7  ;;  %p1006_p12 = scmp.lt.u32.totalorder %s1282_s25, %s1504_s0 }
  0x4a   : > { %p1007_p13 = scmp.lt.u32.totalorder %s1005_s12, %s1000_s9  ;;  %p1009_p8 = scmp.lt.u32.totalorder %s1000_s9, %s1282_s25 }
  0x4b   : > { %p1003_p6 = pnand %p1002_p1, %p1001_p9 }
  0x4c   : > { %p1008_p3 = por %p1007_p13, %p1006_p12 }
  0x4d   : > { %p1004_p11 = pneg %p1003_p6 }
  0x4e   : > { %p1010_p4 = por %p1009_p8, %p1008_p3 }
  0x50   : > { %p1011_p5 = pnand %p1010_p4, %p1004_p11 }
  0x52   : > { %1014 = shalt.err (!%p1011_p5)
}
  0x53   : > { %s1015_s14 = scalar_lea.vmem %s1284_s26, 512  ;;  %s1104_s15 = smov [#allocation2]  }
  0x54   : > { %p1016_p10 = scmp.ne.s32.totalorder %s1284_s26, %s1015_s14  ;;  %s1020_s23 = sshll.u32 %s1104_s15, 4  ;;  %s1021_s23 = int_to_ptr.vmem [resolvable:$false] %s1020_s23 }
  0x55   : > { %s1022_s10 = scalar_lea.vmem %s1021_s23, 1024  ;;  %p1023_p9 = scmp.lt.s32.totalorder %s1284_s26, %s1021_s23 }
  0x56   : > { %p1018_p2 = pnand %p1016_p10, %p1002_p1  ;;  %p1024_p6 = scmp.lt.s32.totalorder %s1022_s10, %s1015_s14 }
  0x58   : > { %p1019_p0 = pneg %p1018_p2  ;;  %p1025_p12 = por %p1024_p6, %p1023_p9 }
  0x5a   : > { %p1026_p13 = pnand %p1025_p12, %p1019_p0 }
  0x5c   : > { %1029 = shalt.err (!%p1026_p13)
}
  0x5d   : > { %s1105_s9 = smov 256   ;;  %s1106_s13 = smov 16  }
  0x5e   : > { %887 = dma.hbm_to_vmem [thread:$0]  (!%p1523_p7), %s1282_s25, 512, %s1284_s26, %s1286_s28, %s1105_s9, %s1105_s9, %s1106_s13  }
  0x5f   : > { %p1524_p1 = scmp.ne.s32.totalorder %s1519_s7, 0 }
  0x60   : > { %s1317_s8 = sand.u32 (!%p1524_p1), 1, %s1092_s19   ;;  %p1525_p11 = scmp.ne.s32.totalorder (!%p1524_p1), %s1516_s29, 0 }
  0x61   : > { %227 = sbr.rel (%p1524_p1) target bundleno = 932 (0x3a4), region = 40  ;;  %s821_s12 = sshll.u32 (!%p1524_p1), %s1317_s8, 5 }
  0x62   : > { %s230_s16 = scalar_lea.sflag (!%p1524_p1), [#allocation3], %s1317_s8  ;;  %s233_s17 = scalar_lea.vmem (!%p1524_p1), [#allocation2], %s821_s12 }
  0x68   : > { %1075 = dma.done.wait (%p1525_p11), %s230_s16, 512  }
  0x69   : > { %1077 = vsyncadd (%p1525_p11), %s230_s16, 4294966784  ;;  %p1526_p7 = scmp.eq.s32.totalorder %s1169_s22, 0 }
  0x6b   : > { %1079 = dma.done.wait (%p1526_p7), [#allocation6], 192   ;;  %p1527_p3 = pmov %p1526_p7 }
  0x6c   : > { %v1107_v0 = vmov 0.0   ;;  %v1333_v1 = vld [vmem:[%s233_s17 + $0x8] sm:$0xff]  ;;  %v1335_v2 = vld [vmem:[%s233_s17 + $0x18] sm:$0xff]  ;;  %v1337_v3 = vld [vmem:[%s233_s17] sm:$0xff]  ;;  %vm273_vm0 = vcmask 130048   ;;  %s1108_s29 = smov 16   ;;  %v354_v12 = vlaneseq }
  0x6d   : > { %1081 = vsyncadd (%p1527_p3), [#allocation6], 4294967104  ;;  %341 = vmatprep.mubr.f32.mxu0 %v1107_v0  ;;  %596 = vmatprep.mubr.f32.mxu1 %v1107_v0  ;;  %v845_v4 = vpack.c.bf16 %v1335_v2, %v1333_v1  ;;  %v1341_v5 = vld [vmem:[%s233_s17 + $0x10] sm:$0xff]  ;;  %v272_v7 = vld [vmem:[#allocation5] sm:$0xff]  ;;  %s1109_s7 = smov 17   ;;  %s1110_s11 = smov 15  }
  0x6e   : > { %v847_v6 = vpack.c.bf16 %v1341_v5, %v1337_v3  ;;  %s1111_s25 = smov 1   ;;  %s1112_s26 = smov 127   ;;  %v362_v15 = vshrl.u32 %v354_v12, 7  ;;  %v1368_v16 = vand.u32 127, %v354_v12  ;;  %vm528_vm9 = vcmask 588800  }
  0x6f   : > { %846 = vmatprep.subr.bf16.mxu0 %v845_v4  ;;  %s1113_s28 = smov 113   ;;  %s1114_s14 = smov 112   ;;  %v826_v21 = vld [vmem:[%s1508_s4 + $0x1] ss:$8 sm:$0x3]  ;;  %vm614_vm10 = vcmask 1043456  }
  0x70   : > { %848 = vmatpush1.bf16.msra.mxu0 %v847_v6  ;;  %s1115_s15 = smov 111   ;;  %v1370_v18 = vsub.s32 0, %v362_v15  ;;  %v1372_v20 = vsub.s32 1, %v362_v15  ;;  %vm377_vm1 = vcmp.lt.s32.totalorder %v1368_v16, 16  ;;  %vm399_vm2 = vcmp.lt.s32.totalorder %v1368_v16, 15  ;;  %p1528_p4 = scmp.ne.s32.totalorder %s1517_s30, 0 }
  0x71   : > { %v828_v22 = vld [vmem:[%s1508_s4 + $0x3] ss:$8 sm:$0x3]  ;;  %v359_v23 = vld [vmem:[%s1508_s4] ss:$8 sm:$0x3] }
  0x72   : > { %v386_v24 = vrot.slane %v826_v21, %v1370_v18  ;;  %v827_v26 = vld [vmem:[%s1508_s4 + $0x2] ss:$8 sm:$0x3]  ;;  %v390_v28 = vrot.slane %v826_v21, %v1372_v20  ;;  %vm421_vm3 = vcmp.lt.s32.totalorder %v1368_v16, 1  ;;  %v434_v32 = vrot.slane %v828_v22, %v1372_v20 }
  0x73   : > { %825 = vmatmul.mubr.msk.f32.vlgmr.msra.gmra.mrb[0].mxu0 %vm273_vm0, %v272_v7  ;;  %v829_v31 = vld [vmem:[%s1508_s4 + $0x5] ss:$8 sm:$0x3]  ;;  %vm356_vm4 = vcmp.lt.s32.totalorder %v1368_v16, 17  ;;  %v364_v33 = vrot.slane %v359_v23, %v1370_v18  ;;  %v368_v34 = vrot.slane %v359_v23, %v1372_v20  ;;  %v412_v35 = vrot.slane %v827_v26, %v1372_v20 }
  0x74   : > { %685 = vmatprep.mubr.f32.mxu0 %v1107_v0  ;;  %v430_v36 = vrot.slane %v828_v22, %v1370_v18  ;;  %vm443_vm5 = vcmp.lt.s32.totalorder %v1368_v16, 127  ;;  %v456_v40 = vrot.slane %v829_v31, %v1372_v20  ;;  %v408_v50 = vrot.slane %v827_v26, %v1370_v18  ;;  %v830_v63 = vld [vmem:[%s1508_s4 + $0x6] ss:$8 sm:$0x3] }
  0x75   : > { %v452_v58 = vrot.slane %v829_v31, %v1370_v18  ;;  %v831_v6 = vld [vmem:[%s1508_s4 + $0x7] ss:$8 sm:$0x3]  ;;  %vm465_vm6 = vcmp.lt.s32.totalorder %v1368_v16, 113  ;;  %v474_v12 = vrot.slane %v830_v63, %v1370_v18  ;;  %vm487_vm7 = vcmp.lt.s32.totalorder %v1368_v16, 112 }
  0x76   : > { %v832_v21 = vld [vmem:[%s1508_s4 + $0x10] ss:$8 sm:$0x3]  ;;  %vm509_vm8 = vcmp.lt.s32.totalorder %v1368_v16, 111  ;;  %v605_v16 = vld [vmem:[%s1507_s3] sm:$0xff]  ;;  %vm607_vm11 = vcmask 31744  }
 0x146   : > { %v343_v8 = vpop.f32.mrb[0].mxu0 }
 0x147   : > { %v1346_v9 = vmax.f32 %v343_v8, 0.0  ;;  %v345_v10 = vpop.f32.mrb[1].mxu0 }
 0x148   : > { %v1351_v11 = vmax.f32 %v345_v10, 0.0 }
 0x149   : > { %373 = vrot.lane.b32.xlu1 %v1346_v9, %s1108_s29  ;;  %350 = vrot.lane.b32.xlu0 %v1346_v9, %s1109_s7 }
 0x14d   : > { %395 = vrot.lane.b32.xlu0 %v1346_v9, %s1110_s11  ;;  %375 = vrot.lane.b32.xlu1 %v1351_v11, %s1108_s29 }
 0x151   : > { %417 = vrot.lane.b32.xlu0 %v1346_v9, %s1111_s25  ;;  %397 = vrot.lane.b32.xlu1 %v1351_v11, %s1110_s11  ;;  %s267_s11 = scalar_lea.vmem [#allocation8], %s821_s12 }
 0x155   : > { %419 = vrot.lane.b32.xlu1 %v1351_v11, %s1111_s25  ;;  %352 = vrot.lane.b32.xlu0 %v1351_v11, %s1109_s7  ;;  %s720_s25 = sshll.u32 %s267_s11, 4  ;;  %s1454_s25 = int_to_ptr.vmem [resolvable:$true] %s720_s25 }
 0x156   : > { %s1030_s23 = scalar_lea.vmem %s1454_s25, 512 }
 0x157   : > { %p1031_p8 = scmp.ne.s32.totalorder %s1454_s25, %s1030_s23 }
 0x159   : > { %441 = vrot.lane.b32.xlu1 %v1351_v11, %s1112_s26  ;;  %439 = vrot.lane.b32.xlu0 %v1346_v9, %s1112_s26  ;;  %s844_s26 = sshll.u32 %s1169_s22, 9  ;;  %p1032_p5 = pnand %p1031_p8, %p1528_p4 }
 0x15a   : > { %s1116_s22 = smov [#allocation8]  }
 0x15b   : > { %p1033_p10 = pneg %p1032_p5  ;;  %s1034_s10 = sshll.u32 %s1116_s22, 4  ;;  %s1035_s10 = int_to_ptr.vmem [resolvable:$false] %s1034_s10 }
 0x15c   : > { %s1036_s9 = scalar_lea.vmem %s1035_s10, 1024  ;;  %p1037_p2 = scmp.lt.s32.totalorder %s1454_s25, %s1035_s10 }
 0x15d   : > { %463 = vrot.lane.b32.xlu1 %v1351_v11, %s1113_s28  ;;  %461 = vrot.lane.b32.xlu0 %v1346_v9, %s1113_s28  ;;  %p1038_p0 = scmp.lt.s32.totalorder %s1036_s9, %s1030_s23 }
 0x15f   : > { %p1039_p9 = por %p1038_p0, %p1037_p2 }
 0x161   : > { %485 = vrot.lane.b32.xlu1 %v1351_v11, %s1114_s14  ;;  %483 = vrot.lane.b32.xlu0 %v1346_v9, %s1114_s14  ;;  %s1459_s14 = scalar_lea.hbm %s1509_s5, %s844_s26  ;;  %p1040_p6 = pnand %p1039_p9, %p1033_p10 }
 0x165   : > { %507 = vrot.lane.b32.xlu1 %v1351_v11, %s1115_s15  ;;  %505 = vrot.lane.b32.xlu0 %v1346_v9, %s1115_s15  ;;  %s707_s15 = scalar_lea.sflag [#allocation4], %s1317_s8 }
 0x1bb   : > { %v374_v13 = vpop.permute.xlu1 %373  ;;  %v351_v14 = vpop.permute.xlu0 %350 }
 0x1bf   : > { %v396_v17 = vpop.permute.xlu0 %395  ;;  %v376_v19 = vpop.permute.xlu1 %375 }
 0x1c0   : > { %v378_v29 = vsel %vm377_vm1, %v374_v13, %v376_v19  ;;  %v379_v30 = vsel %vm377_vm1, %v376_v19, %v374_v13  ;;  %v478_v13 = vrot.slane %v830_v63, %v1372_v20  ;;  %v500_v19 = vrot.slane %v831_v6, %v1372_v20 }
 0x1c1   : > { %v393_v37 = vmul.f32 %v386_v24, %v379_v30  ;;  %v394_v41 = vmul.f32 %v390_v28, %v378_v29  ;;  %v522_v28 = vrot.slane %v832_v21, %v1372_v20 }
 0x1c3   : > { %v418_v25 = vpop.permute.xlu0 %417  ;;  %v398_v27 = vpop.permute.xlu1 %397 }
 0x1c4   : > { %v400_v42 = vsel %vm399_vm2, %v396_v17, %v398_v27  ;;  %v401_v51 = vsel %vm399_vm2, %v398_v27, %v396_v17  ;;  %v496_v17 = vrot.slane %v831_v6, %v1370_v18 }
 0x1c5   : > { %v416_v52 = vmul.f32 %v412_v35, %v400_v42  ;;  %v415_v4 = vmul.f32 %v408_v50, %v401_v51 }
 0x1c7   : > { %v420_v38 = vpop.permute.xlu1 %419  ;;  %v353_v39 = vpop.permute.xlu0 %352 }
 0x1c8   : > { %v422_v43 = vsel %vm421_vm3, %v418_v25, %v420_v38  ;;  %v357_v44 = vsel %vm356_vm4, %v351_v14, %v353_v39  ;;  %v358_v45 = vsel %vm356_vm4, %v353_v39, %v351_v14  ;;  %v423_v46 = vsel %vm421_vm3, %v420_v38, %v418_v25 }
 0x1c9   : > { %v438_v47 = vmul.f32 %v434_v32, %v422_v43  ;;  %v371_v48 = vmul.f32 %v364_v33, %v358_v45  ;;  %v372_v49 = vmul.f32 %v368_v34, %v357_v44  ;;  %v437_v57 = vmul.f32 %v430_v36, %v423_v46  ;;  %v606_v44 = vld [vmem:[%s1507_s3 + $0x8] sm:$0xff] }
 0x1cb   : > { %v442_v53 = vpop.permute.xlu1 %441  ;;  %v440_v54 = vpop.permute.xlu0 %439  ;;  %v849_v55 = vpack.c.bf16 %v394_v41, %v372_v49  ;;  %v851_v56 = vpack.c.bf16 %v393_v37, %v371_v48  ;;  %v853_v62 = vpack.c.bf16 %v438_v47, %v416_v52  ;;  %v855_v14 = vpack.c.bf16 %v437_v57, %v415_v4 }
 0x1cc   : > { %v445_v59 = vsel %vm443_vm5, %v442_v53, %v440_v54  ;;  %v444_v60 = vsel %vm443_vm5, %v440_v54, %v442_v53  ;;  %v518_v37 = vrot.slane %v832_v21, %v1370_v18 }
 0x1cd   : > { %v460_v61 = vmul.f32 %v456_v40, %v445_v59  ;;  %850 = vmatprep.subr.bf16.mxu1 %v849_v55  ;;  %v459_v10 = vmul.f32 %v452_v58, %v444_v60  ;;  %v527_v40 = vld [vmem:[#allocation7] sm:$0xf] }
 0x1ce   : > { %852 = vmatpush1.bf16.msra.mxu1 %v851_v56 }
 0x1cf   : > { %v464_v7 = vpop.permute.xlu1 %463  ;;  %854 = vmatprep.subr.bf16.mxu1 %v853_v62  ;;  %v462_v8 = vpop.permute.xlu0 %461  ;;  %v857_v15 = vpack.c.bf16 %v460_v61, %v1351_v11  ;;  %v859_v27 = vpack.c.bf16 %v459_v10, %v1346_v9 }
 0x1d0   : > { %v466_v22 = vsel %vm465_vm6, %v462_v8, %v464_v7  ;;  %v467_v23 = vsel %vm465_vm6, %v464_v7, %v462_v8 }
 0x1d1   : > { %v481_v29 = vmul.f32 %v474_v12, %v466_v22  ;;  %v482_v30 = vmul.f32 %v478_v13, %v467_v23 }
 0x1d2   : > { %856 = vmatpush1.bf16.msra.mxu1 %v855_v14 }
 0x1d3   : > { %v486_v24 = vpop.permute.xlu1 %485  ;;  %858 = vmatprep.subr.bf16.mxu1 %v857_v15  ;;  %v484_v25 = vpop.permute.xlu0 %483 }
 0x1d4   : > { %v488_v26 = vsel %vm487_vm7, %v484_v25, %v486_v24  ;;  %v489_v11 = vsel %vm487_vm7, %v486_v24, %v484_v25 }
 0x1d5   : > { %v503_v31 = vmul.f32 %v496_v17, %v488_v26  ;;  %v504_v32 = vmul.f32 %v500_v19, %v489_v11 }
 0x1d6   : > { %860 = vmatpush1.bf16.msra.mxu1 %v859_v27 }
 0x1d7   : > { %v508_v33 = vpop.permute.xlu1 %507  ;;  %v506_v34 = vpop.permute.xlu0 %505  ;;  %v861_v35 = vpack.c.bf16 %v504_v32, %v482_v30  ;;  %v863_v36 = vpack.c.bf16 %v503_v31, %v481_v29 }
 0x1d8   : > { %v511_v38 = vsel %vm509_vm8, %v508_v33, %v506_v34  ;;  %v510_v39 = vsel %vm509_vm8, %v506_v34, %v508_v33 }
 0x1d9   : > { %v526_v9 = vmul.f32 %v522_v28, %v511_v38  ;;  %862 = vmatprep.subr.bf16.mxu1 %v861_v35  ;;  %v525_v20 = vmul.f32 %v518_v37, %v510_v39 }
 0x1da   : > { %864 = vmatpush1.bf16.msra.mxu1 %v863_v36 }
 0x1db   : > { %548 = vmatprep.subr.mxu1 %v526_v9 }
 0x1de   : > { %549 = vmatpush1.msra.mxu1 %v525_v20 }
 0x1df   : > { %833 = vmatmul.mubr.msk.f32.vlgmr.msra.gmra.mrb[0].mxu1 %vm528_vm9, %v527_v40 }
 0x2b2   : > { %v598_v41 = vpop.f32.mrb[0].mxu1 }
 0x2b3   : > { %v600_v42 = vpop.f32.mrb[1].mxu1  ;;  %v603_v43 = vmax.f32 %v598_v41, 0.0 }
 0x2b4   : > { %v604_v18 = vmax.f32 %v600_v42, 0.0 }
 0x2b6   : > { %834 = vmatprep.subr.msk.mxu0 %vm614_vm10, %v604_v18 }
 0x2b7   : > { %835 = vmatpush1.msk.msra.mxu0 %vm614_vm10, %v603_v43 }
 0x2b8   : > { %836 = vmatmul.mubr.msk.f32.vlgmr.msra.gmra.mrb[2].mxu0 %vm607_vm11, %v605_v16 }
 0x2b9   : > { %691 = vmatprep.mubr.f32.mxu0 %v1107_v0 }
 0x2bc   : > { %837 = vmatmul.mubr.msk.f32.gmra.mrb[4].mxu0 %vm607_vm11, %v606_v44 }
 0x38b   : > { %v687_v45 = vpop.f32.mrb[2].mxu0 }
 0x38c   : > { %v688_v46 = vadd.f32 %v687_v45, %v1337_v3  ;;  %v689_v47 = vpop.f32.mrb[3].mxu0 }
 0x38d   : > { %v690_v48 = vadd.f32 %v689_v47, %v1333_v1 }
 0x38e   : > { %v698_v49 = vmax.f32 %v688_v46, 0.0 }
 0x38f   : > { %v699_v50 = vmax.f32 %v690_v48, 0.0  ;;  %v693_v51 = vpop.f32.mrb[4].mxu0 }
 0x390   : > { %702 = vst [vmem:[%s267_s11] sm:$0xff] %v698_v49  ;;  %v694_v0 = vadd.f32 %v693_v51, %v1341_v5  ;;  %v695_v52 = vpop.f32.mrb[5].mxu0 }
 0x391   : > { %703 = vst [vmem:[%s267_s11 + $0x8] sm:$0xff] %v699_v50  ;;  %v696_v53 = vadd.f32 %v695_v52, %v1335_v2 }
 0x392   : > { %v700_v1 = vmax.f32 %v694_v0, 0.0 }
 0x393   : > { %v701_v3 = vmax.f32 %v696_v53, 0.0 }
 0x394   : > { %704 = vst [vmem:[%s267_s11 + $0x10] sm:$0xff] %v700_v1 }
 0x395   : > { %705 = vst [vmem:[%s267_s11 + $0x18] sm:$0xff] %v701_v3 }
 0x396   : > { %1043 = shalt.err (!%p1040_p6)
}
 0x397   : > { %s1044_s13 = scalar_lea.hbm %s1459_s14, 512  ;;  %s1048_s7 = scalar_lea.hbm %s1509_s5, 1024 }
 0x398   : > { %p1045_p12 = scmp.ne.s32.totalorder %s1459_s14, %s1044_s13  ;;  %p1049_p11 = scmp.lt.u32.totalorder %s1459_s14, %s1509_s5 }
 0x399   : > { %p1050_p7 = scmp.lt.u32.totalorder %s1048_s7, %s1044_s13  ;;  %p1052_p8 = scmp.lt.u32.totalorder %s1044_s13, %s1459_s14 }
 0x39a   : > { %p1046_p13 = pnand %p1045_p12, %p1528_p4 }
 0x39b   : > { %p1051_p3 = por %p1050_p7, %p1049_p11 }
 0x39c   : > { %p1047_p1 = pneg %p1046_p13 }
 0x39d   : > { %p1053_p5 = por %p1052_p8, %p1051_p3 }
 0x39f   : > { %p1054_p10 = pnand %p1053_p5, %p1047_p1 }
 0x3a1   : > { %1057 = shalt.err (!%p1054_p10)
}
 0x3a2   : > { %s1117_s12 = smov 256  }
 0x3a3   : > { %875 = dma.vmem_to_hbm [thread:$0]  (%p1528_p4), %s1454_s25, 512, %s1459_s14, %s707_s15, %s1117_s12, %s1117_s12, %s1108_s29  }
 0x3a4 PF: > { %s735_s28 = sand.u32 1, %s1088_s18   ;;  %p1529_p2 = scmp.ne.s32.totalorder %s1518_s6, 0 }
 0x3a5   : > { %p1530_p0 = scmp.ge.s32.totalorder %s1100_s21, 2  ;;  %s736_s23 = scalar_lea.sflag [#allocation4], %s735_s28 }
 0x3a7   : > { %p889_p9 = pnand %p1530_p0, %p1529_p2 }
 0x3a9   : > { %1083 = dma.done.wait (!%p889_p9), %s736_s23, 512  }
 0x3aa   : > { %1085 = vsyncadd (!%p889_p9), %s736_s23, 4294966784  ;;  %p19_p6 = scmp.ge.s32.totalorder %s1173_s24, 4   ;;  %s1531_s18 = smov %s1092_s19 }
 0x3ab   : > { %s1532_s19 = smov %s1096_s20  ;;  %s1533_s20 = smov %s1185_s27 }
 0x3ac   : > { %s1534_s21 = smov %s1173_s24  ;;  %21 = sbr.rel (!%p19_p6) target bundleno = 6 (0x6), region = 100 }
 0x3b3   :  { %741 = vsyncpa [#allocation3], 1 }
 0x3b4   :  { %743 = vsyncpa [#allocation3 + $0x1], 1 }
 0x3b5   :  { %744 = vsyncpa [#allocation6], 1 }
 0x3b6   :  { %745 = vsyncpa [#allocation4], 1 }
 0x3b7   :  { %747 = vsyncpa [#allocation4 + $0x1], 1 }

</bundles_post_ra>
